<compile_context>
chip_gen: v7x
topology: tpu7x:2x2x1
jax: 0.10.0
libtpu: 0.0.40
codegen_flags: <defaults>
</compile_context>

<pallas_src>
import functools

import jax
import jax.numpy as jnp
from jax import lax
from jax.experimental import pallas as pl
from jax.experimental.pallas import tpu as pltpu


def _round_up(a: int, b: int) -> int:
    return (a + b - 1) // b * b


def _matmul_kernel(x_ref, w_ref, o_ref, acc_ref):
    # Grid = (M//tm, N//tn, K//tk); K (reduction) is last, "arbitrary" axis.
    @pl.when(pl.program_id(2) == 0)
    def _():
        acc_ref[...] = jnp.zeros_like(acc_ref)

    # x tile: (tm, tk), w tile: (tn, tk)  -> contract last dims (no transpose
    # ever materialized; weight stays in its PyTorch (out, in) layout).
    acc_ref[...] += lax.dot_general(
        x_ref[...],
        w_ref[...],
        dimension_numbers=(((1,), (1,)), ((), ())),
        preferred_element_type=jnp.float32,
    )

    @pl.when(pl.program_id(2) == pl.num_programs(2) - 1)
    def _():
        o_ref[...] = acc_ref[...].astype(o_ref.dtype)


def _matmul_bias_kernel(x_ref, w_ref, b_ref, o_ref, acc_ref):
    @pl.when(pl.program_id(2) == 0)
    def _():
        acc_ref[...] = jnp.zeros_like(acc_ref)

    acc_ref[...] += lax.dot_general(
        x_ref[...],
        w_ref[...],
        dimension_numbers=(((1,), (1,)), ((), ())),
        preferred_element_type=jnp.float32,
    )

    @pl.when(pl.program_id(2) == pl.num_programs(2) - 1)
    def _():
        # Fused bias epilogue: b_ref is (1, tn), broadcasts over tm rows.
        o_ref[...] = (acc_ref[...] + b_ref[...].astype(jnp.float32)).astype(
            o_ref.dtype
        )


def row_parallel_linear(
    x,
    weight,
    bias=None,
    *,
    tm=None,
    tn=None,
    tk=None,
    compute_dtype=None,
):
    """Pallas equivalent of RowParallelLinear.forward with world_size == 1.

    x:      (..., in_features)
    weight: (out_features, in_features)   (PyTorch convention, used as-is)
    bias:   optional (out_features,)
    compute_dtype: optionally cast operands (e.g. jnp.bfloat16 on v6e/v7x).
    """
    out_features, in_features = weight.shape
    assert x.shape[-1] == in_features
    lead_shape = x.shape[:-1]
    M = 1
    for d in lead_shape:
        M *= d
    K, N = in_features, out_features

    out_dtype = x.dtype
    x2d = x.reshape(M, K)
    w = weight  # (N, K) — native layout, no HBM transpose.
    if compute_dtype is not None:
        x2d = x2d.astype(compute_dtype)
        w = w.astype(compute_dtype)

    # --- Tile selection (MXU/layout friendly, VMEM-bounded) ---------------
    # tm: sublane dim, multiple of 8.  tn: output lane dim, multiple of 128.
    # tk: reduction lane dim, multiple of 128.
    if tm is None:
        tm = min(256, _round_up(M, 8))
    if tn is None:
        tn = min(512, _round_up(N, 128))
    if tk is None:
        tk = min(512, _round_up(K, 128))

    Mp = _round_up(M, tm)
    Np = _round_up(N, tn)
    Kp = _round_up(K, tk)

    # Zero-pad (zeros along K contribute nothing; padded N columns sliced off).
    if (Mp, Kp) != (M, K):
        x2d = jnp.pad(x2d, ((0, Mp - M), (0, Kp - K)))
    if (Np, Kp) != (N, K):
        w = jnp.pad(w, ((0, Np - N), (0, Kp - K)))

    has_bias = bias is not None
    if has_bias:
        b2d = bias.reshape(1, N).astype(jnp.float32)
        if Np != N:
            b2d = jnp.pad(b2d, ((0, 0), (0, Np - N)))

    grid = (Mp // tm, Np // tn, Kp // tk)

    in_bytes = jnp.dtype(x2d.dtype).itemsize
    out_bytes = jnp.dtype(out_dtype).itemsize

    # --- VMEM budget (double-buffered inputs/outputs + f32 accumulator) ---
    vmem_bytes = (
        2 * (tm * tk + tn * tk) * in_bytes  # x / w tiles, double-buffered
        + 2 * tm * tn * out_bytes           # output tiles, double-buffered
        + tm * tn * 4                       # f32 accumulator scratch
        + (2 * tn * 4 if has_bias else 0)   # bias tile
    )
    vmem_limit = min(64 << 20, max(32 << 20, vmem_bytes + (16 << 20)))

    cost = pl.CostEstimate(
        flops=2 * Mp * Np * Kp,
        transcendentals=0,
        bytes_accessed=(Mp * Kp + Np * Kp) * in_bytes + Mp * Np * out_bytes,
    )

    in_specs = [
        pl.BlockSpec((tm, tk), lambda i, j, k: (i, k)),
        pl.BlockSpec((tn, tk), lambda i, j, k: (j, k)),
    ]
    inputs = [x2d, w]
    if has_bias:
        in_specs.append(pl.BlockSpec((1, tn), lambda i, j, k: (0, j)))
        inputs.append(b2d)
        kernel = _matmul_bias_kernel
    else:
        kernel = _matmul_kernel

    y2d = pl.pallas_call(
        kernel,
        out_shape=jax.ShapeDtypeStruct((Mp, Np), out_dtype),
        grid_spec=pltpu.PrefetchScalarGridSpec(
            num_scalar_prefetch=0,
            grid=grid,
            in_specs=in_specs,
            out_specs=pl.BlockSpec((tm, tn), lambda i, j, k: (i, j)),
            scratch_shapes=[pltpu.VMEM((tm, tn), jnp.float32)],
        ),
        compiler_params=pltpu.CompilerParams(
            dimension_semantics=("parallel", "parallel", "arbitrary"),
            vmem_limit_bytes=int(vmem_limit),
        ),
        cost_estimate=cost,
    )(*inputs)

    # world_size == 1: dist.all_reduce is a no-op.
    # TODO(synk): for world_size > 1, a cross-device all-reduce (remote DMA
    # ring) would be needed here; not applicable for world_size == 1.

    if (Mp, Np) != (M, N):
        y2d = y2d[:M, :N]
    return y2d.reshape(*lead_shape, out_features)


if __name__ == "__main__":
    # Small shapes consistent with the module's forward (token-major linear).
    batch, seq = 2, 8
    in_features, out_features = 256, 256  # world_size=1 -> part_in == in

    key = jax.random.PRNGKey(0)
    kx, kw, kb = jax.random.split(key, 3)
    x = jax.random.normal(kx, (batch, seq, in_features), dtype=jnp.float32)
    # Deterministic parameter init (module uses torch.empty; we use normal).
    weight = (
        jax.random.normal(kw, (out_features, in_features), dtype=jnp.float32)
        / jnp.sqrt(in_features)
    )
    bias = jax.random.normal(kb, (out_features,), dtype=jnp.float32)

    # Default path: bias=False (matches RowParallelLinear default).
    y = row_parallel_linear(x, weight)
    y = jax.block_until_ready(y)
    y_ref = jnp.einsum("bsk,nk->bsn", x, weight)
    assert y.shape == (batch, seq, out_features)
    assert jnp.allclose(y, y_ref, atol=1e-4, rtol=1e-4)

    # Fused-bias path sanity check.
    yb = jax.block_until_ready(row_parallel_linear(x, weight, bias))
    assert jnp.allclose(yb, y_ref + bias[None, None, :], atol=1e-4, rtol=1e-4)

    # Non-tile-aligned M path (padding) sanity check.
    x_odd = x[:, :5, :]  # M = 10, not a multiple of 8
    y_odd = jax.block_until_ready(row_parallel_linear(x_odd, weight))
    assert jnp.allclose(
        y_odd, jnp.einsum("bsk,nk->bsn", x_odd, weight), atol=1e-4, rtol=1e-4
    )

    print("KERNEL_OK")
</pallas_src>

<mosaic_0001>
module attributes {stable_mosaic.version = 11 : i64} {
  func.func @_matmul_kernel(%arg0: i32, %arg1: i32, %arg2: i32, %arg3: memref<16x256xf32, #tpu.memory_space<vmem>>, %arg4: memref<256x256xf32, #tpu.memory_space<vmem>>, %arg5: memref<16x256xf32, #tpu.memory_space<vmem>>, %arg6: memref<16x256xf32, #tpu.memory_space<vmem>>) attributes {dimension_semantics = [#tpu.dimension_semantics<parallel>, #tpu.dimension_semantics<parallel>, #tpu.dimension_semantics<arbitrary>], iteration_bounds = array<i64: 1, 1, 1>, scalar_prefetch = 0 : i64, scratch_operands = 1 : i64, tpu.core_type = #tpu.core_type<tc>, window_params = [{transform_indices = @transform_0, window_bounds = array<i64: 16, 256>}, {transform_indices = @transform_1, window_bounds = array<i64: 256, 256>}, {transform_indices = @transform_2, window_bounds = array<i64: 16, 256>}]} {
    %c0_i32 = arith.constant 0 : i32
    %0 = arith.cmpi eq, %arg2, %c0_i32 : i32
    %1 = arith.extui %0 : i1 to i32
    %c0_i32_0 = arith.constant 0 : i32
    %2 = arith.cmpi ne, %1, %c0_i32_0 : i32
    scf.if %2 {
      %cst_10 = arith.constant 0.000000e+00 : f32
      %12 = vector.broadcast %cst_10 : f32 to vector<16x256xf32>
      %c0_11 = arith.constant 0 : index
      %c0_12 = arith.constant 0 : index
      %13 = vector.load %arg6[%c0_11, %c0_12] : memref<16x256xf32, #tpu.memory_space<vmem>>, vector<16x256xf32>
      tpu.vector_store %arg6[%c0_11, %c0_12], %12 {strides = array<i32>} : memref<16x256xf32, #tpu.memory_space<vmem>>, vector<16x256xf32>,
    } else {
    }
    %c0 = arith.constant 0 : index
    %c0_1 = arith.constant 0 : index
    %3 = vector.load %arg6[%c0, %c0_1] : memref<16x256xf32, #tpu.memory_space<vmem>>, vector<16x256xf32>
    %c0_2 = arith.constant 0 : index
    %c0_3 = arith.constant 0 : index
    %4 = vector.load %arg3[%c0_2, %c0_3] : memref<16x256xf32, #tpu.memory_space<vmem>>, vector<16x256xf32>
    %c0_4 = arith.constant 0 : index
    %c0_5 = arith.constant 0 : index
    %5 = vector.load %arg4[%c0_4, %c0_5] : memref<256x256xf32, #tpu.memory_space<vmem>>, vector<256x256xf32>
    %cst = arith.constant dense<0.000000e+00> : vector<16x256xf32>
    %6 = tpu.matmul %4, %5, %cst {dimension_numbers = #tpu.dot_dimension_numbers<[1], [1], [0], [0], [0, 0, 1, 0], [], []>} : vector<16x256xf32>, vector<256x256xf32>, vector<16x256xf32> -> vector<16x256xf32>
    %7 = arith.addf %3, %6 : vector<16x256xf32>
    %c0_6 = arith.constant 0 : index
    %c0_7 = arith.constant 0 : index
    %8 = vector.load %arg6[%c0_6, %c0_7] : memref<16x256xf32, #tpu.memory_space<vmem>>, vector<16x256xf32>
    tpu.vector_store %arg6[%c0_6, %c0_7], %7 {strides = array<i32>} : memref<16x256xf32, #tpu.memory_space<vmem>>, vector<16x256xf32>,
    %c0_i32_8 = arith.constant 0 : i32
    %9 = arith.cmpi eq, %arg2, %c0_i32_8 : i32
    %10 = arith.extui %9 : i1 to i32
    %c0_i32_9 = arith.constant 0 : i32
    %11 = arith.cmpi ne, %10, %c0_i32_9 : i32
    scf.if %11 {
      %c0_10 = arith.constant 0 : index
      %c0_11 = arith.constant 0 : index
      %12 = vector.load %arg6[%c0_10, %c0_11] : memref<16x256xf32, #tpu.memory_space<vmem>>, vector<16x256xf32>
      %c0_12 = arith.constant 0 : index
      %c0_13 = arith.constant 0 : index
      %13 = vector.load %arg5[%c0_12, %c0_13] : memref<16x256xf32, #tpu.memory_space<vmem>>, vector<16x256xf32>
      tpu.vector_store %arg5[%c0_12, %c0_13], %12 {strides = array<i32>} : memref<16x256xf32, #tpu.memory_space<vmem>>, vector<16x256xf32>,
    } else {
    }
    return
  }
  func.func @transform_0(%arg0: i32, %arg1: i32, %arg2: i32) -> (i32, i32) {
    %c0_i32 = arith.constant 0 : i32
    return %arg0, %arg2 : i32, i32
  }
  func.func @transform_1(%arg0: i32, %arg1: i32, %arg2: i32) -> (i32, i32) {
    %c0_i32 = arith.constant 0 : i32
    return %arg1, %arg2 : i32, i32
  }
  func.func @transform_2(%arg0: i32, %arg1: i32, %arg2: i32) -> (i32, i32) {
    %c0_i32 = arith.constant 0 : i32
    return %arg0, %arg1 : i32, i32
  }
}

</mosaic_0001>

<bundles_post_ra>
// kernel: tpu_custom_call.1
= control target key start
LH: loop header
LB: loop body
LE: loop exit
PB: predicated region body
PF: predicated region fallthrough
CT: control target
= control target key end

     0   :  { %7 = vsyncpa [#allocation4], 0  ;;  %s472_s0 = inlined_call_operand.hbm [shape: f32[16,256], index: 0, kind: input, shape index: {}]   ;;  %s473_s1 = inlined_call_operand.hbm [shape: f32[256,256], index: 1, kind: input, shape index: {}]   ;;  %s474_s2 = inlined_call_operand.hbm [shape: f32[16,256], index: 2, kind: output, shape index: {}]  }
   0x1   :  { %8 = vsyncpa [#allocation7], 0 }
   0x2   :  { %9 = vsyncpa [#allocation5], 0  ;;  %s407_s9 = smov [#allocation3]   ;;  %s335_s13 = scalar_lea.hbm %s472_s0, 512 }
   0x3   :  { %s15_s10 = sshll.u32 %s407_s9, 4  ;;  %p336_p0 = scmp.ne.s32.totalorder %s472_s0, %s335_s13  ;;  %s16_s10 = int_to_ptr.vmem [resolvable:$true] %s15_s10 }
   0x4   :  { %p339_p1 = scmp.lt.u32.totalorder %s335_s13, %s472_s0 }
   0x6   :  { %p341_p2 = pnand %p339_p1, %p336_p0 }
   0x8   :  { %344 = shalt.err (!%p341_p2)
}
   0x9   :  { %s345_s18 = scalar_lea.vmem %s16_s10, 512  ;;  %p350_p4 = scmp.lt.s32.totalorder %s16_s10, %s16_s10 }
   0xa   :  { %p346_p3 = scmp.ne.s32.totalorder %s16_s10, %s345_s18  ;;  %p351_p5 = scmp.lt.s32.totalorder %s345_s18, %s345_s18 }
   0xc   :  { %p352_p6 = por %p351_p5, %p350_p4 }
   0xe   :  { %p353_p7 = pnand %p352_p6, %p346_p3 }
  0x10   :  { %356 = shalt.err (!%p353_p7)
}
  0x11   :  { %s408_s19 = smov 256   ;;  %s409_s20 = smov 16  }
  0x12   :  { %21 = dma.hbm_to_vmem [thread:$0]  %s472_s0, 512, %s16_s10, [#allocation4], %s408_s19, %s408_s19, %s409_s20  }
  0x13   :  { %s410_s23 = smov [#allocation6]   ;;  %s357_s27 = scalar_lea.hbm %s473_s1, 8192 }
  0x14   :  { %s27_s24 = sshll.u32 %s410_s23, 4  ;;  %p358_p8 = scmp.ne.s32.totalorder %s473_s1, %s357_s27  ;;  %s28_s24 = int_to_ptr.vmem [resolvable:$true] %s27_s24 }
  0x15   :  { %p361_p9 = scmp.lt.u32.totalorder %s357_s27, %s473_s1 }
  0x17   :  { %p363_p10 = pnand %p361_p9, %p358_p8 }
  0x19   :  { %366 = shalt.err (!%p363_p10)
}
  0x1a   :  { %s367_s4 = scalar_lea.vmem %s28_s24, 8192  ;;  %p372_p12 = scmp.lt.s32.totalorder %s28_s24, %s28_s24 }
  0x1b   :  { %p368_p11 = scmp.ne.s32.totalorder %s28_s24, %s367_s4  ;;  %p373_p13 = scmp.lt.s32.totalorder %s367_s4, %s367_s4 }
  0x1d   :  { %p374_p0 = por %p373_p13, %p372_p12 }
  0x1f   :  { %p375_p1 = pnand %p374_p0, %p368_p11 }
  0x21   :  { %378 = shalt.err (!%p375_p1)
}
  0x22   :  { %33 = dma.hbm_to_vmem [thread:$0]  %s473_s1, 8192, %s28_s24, [#allocation7], %s408_s19, %s408_s19, %s409_s20  }
  0x23   :  { %401 = dma.done.wait [#allocation4], 512  }
  0x24   :  { %402 = vsyncadd [#allocation4], 4294966784 }
  0x25   :  { %403 = dma.done.wait [#allocation7], 8192  }
  0x26   :  { %404 = vsyncadd [#allocation7], 4294959104  ;;  %v57_v0 = vld [vmem:[#allocation6 + $0x8] sm:$0xff]  ;;  %v59_v1 = vld [vmem:[#allocation6 + $0x18] sm:$0xff]  ;;  %s411_s1 = smov [#allocation8]  }
  0x27   :  { %v56_v2 = vld [vmem:[#allocation6] sm:$0xff]  ;;  %v234_v3 = vpack.c.bf16 %v59_v1, %v57_v0  ;;  %v58_v4 = vld [vmem:[#allocation6 + $0x10] sm:$0xff]  ;;  %v61_v5 = vld [vmem:[#allocation6 + $0x28] sm:$0xff]  ;;  %s221_s6 = sshll.u32 %s411_s1, 4  ;;  %s222_s6 = int_to_ptr.vmem [resolvable:$true] %s221_s6 }
  0x28   :  { %v63_v6 = vld [vmem:[#allocation6 + $0x38] sm:$0xff]  ;;  %v236_v7 = vpack.c.bf16 %v58_v4, %v56_v2  ;;  %v60_v9 = vld [vmem:[#allocation6 + $0x20] sm:$0xff]  ;;  %v62_v10 = vld [vmem:[#allocation6 + $0x30] sm:$0xff]  ;;  %s379_s7 = scalar_lea.vmem %s222_s6, 512  ;;  %p384_p3 = scmp.lt.s32.totalorder %s222_s6, %s222_s6 }
  0x29   :  { %v238_v8 = vpack.c.bf16 %v63_v6, %v61_v5  ;;  %235 = vmatprep.subr.bf16.mxu0 %v234_v3  ;;  %298 = vmatprep.subr.bf16.mxu1 %v234_v3  ;;  %v65_v11 = vld [vmem:[#allocation6 + $0x48] sm:$0xff]  ;;  %v67_v12 = vld [vmem:[#allocation6 + $0x58] sm:$0xff]  ;;  %v240_v13 = vpack.c.bf16 %v62_v10, %v60_v9  ;;  %v64_v15 = vld [vmem:[#allocation6 + $0x40] sm:$0xff]  ;;  %p380_p2 = scmp.ne.s32.totalorder %s222_s6, %s379_s7  ;;  %p385_p4 = scmp.lt.s32.totalorder %s379_s7, %s379_s7 }
  0x2a   :  { %237 = vmatpush1.bf16.xpose.msra.mxu0 %v236_v7  ;;  %314 = vmatpush1.bf16.xpose.msra.mxu1 %v236_v7  ;;  %v242_v14 = vpack.c.bf16 %v67_v12, %v65_v11  ;;  %v66_v16 = vld [vmem:[#allocation6 + $0x50] sm:$0xff]  ;;  %v69_v17 = vld [vmem:[#allocation6 + $0x68] sm:$0xff]  ;;  %v71_v18 = vld [vmem:[#allocation6 + $0x78] sm:$0xff] }
  0x2b   :  { %239 = vmatprep.subr.bf16.mxu0 %v238_v8  ;;  %299 = vmatprep.subr.bf16.mxu1 %v238_v8  ;;  %v244_v19 = vpack.c.bf16 %v66_v16, %v64_v15  ;;  %v246_v20 = vpack.c.bf16 %v71_v18, %v69_v17  ;;  %v68_v21 = vld [vmem:[#allocation6 + $0x60] sm:$0xff]  ;;  %v70_v22 = vld [vmem:[#allocation6 + $0x70] sm:$0xff]  ;;  %v53_v23 = vld [vmem:[#allocation3 + $0x8] sm:$0xff]  ;;  %p386_p5 = por %p385_p4, %p384_p3 }
  0x2c   :  { %v55_v24 = vld [vmem:[#allocation3 + $0x18] sm:$0xff]  ;;  %v73_v25 = vld [vmem:[#allocation6 + $0x88] sm:$0xff]  ;;  %184 = vmatprep.mubr.f32.mxu0 %v53_v23  ;;  %v248_v27 = vpack.c.bf16 %v70_v22, %v68_v21  ;;  %v72_v29 = vld [vmem:[#allocation6 + $0x80] sm:$0xff] }
  0x2d   :  { %v75_v26 = vld [vmem:[#allocation6 + $0x98] sm:$0xff]  ;;  %190 = vmatprep.mubr.f32.mxu1 %v55_v24  ;;  %v74_v30 = vld [vmem:[#allocation6 + $0x90] sm:$0xff]  ;;  %v77_v31 = vld [vmem:[#allocation6 + $0xa8] sm:$0xff]  ;;  %p387_p6 = pnand %p386_p5, %p380_p2 }
  0x2e   :  { %v250_v28 = vpack.c.bf16 %v75_v26, %v73_v25  ;;  %v79_v32 = vld [vmem:[#allocation6 + $0xb8] sm:$0xff]  ;;  %v252_v33 = vpack.c.bf16 %v74_v30, %v72_v29  ;;  %v76_v35 = vld [vmem:[#allocation6 + $0xa0] sm:$0xff]  ;;  %v78_v36 = vld [vmem:[#allocation6 + $0xb0] sm:$0xff] }
  0x2f   :  { %v254_v34 = vpack.c.bf16 %v79_v32, %v77_v31  ;;  %v81_v37 = vld [vmem:[#allocation6 + $0xc8] sm:$0xff]  ;;  %v83_v38 = vld [vmem:[#allocation6 + $0xd8] sm:$0xff]  ;;  %v256_v39 = vpack.c.bf16 %v78_v36, %v76_v35  ;;  %v80_v41 = vld [vmem:[#allocation6 + $0xc0] sm:$0xff] }
  0x30   :  { %v258_v40 = vpack.c.bf16 %v83_v38, %v81_v37  ;;  %v82_v42 = vld [vmem:[#allocation6 + $0xd0] sm:$0xff]  ;;  %v85_v43 = vld [vmem:[#allocation6 + $0xe8] sm:$0xff]  ;;  %v87_v44 = vld [vmem:[#allocation6 + $0xf8] sm:$0xff] }
  0x31   :  { %v260_v45 = vpack.c.bf16 %v82_v42, %v80_v41  ;;  %v262_v46 = vpack.c.bf16 %v87_v44, %v85_v43  ;;  %v84_v47 = vld [vmem:[#allocation6 + $0xe0] sm:$0xff]  ;;  %v86_v48 = vld [vmem:[#allocation6 + $0xf0] sm:$0xff]  ;;  %v89_v49 = vld [vmem:[#allocation6 + $0x108] sm:$0xff] }
  0x32   :  { %241 = vmatpush1.bf16.xpose.msra.mxu0 %v240_v13  ;;  %315 = vmatpush1.bf16.xpose.msra.mxu1 %v240_v13  ;;  %v91_v50 = vld [vmem:[#allocation6 + $0x118] sm:$0xff]  ;;  %v264_v51 = vpack.c.bf16 %v86_v48, %v84_v47  ;;  %v88_v53 = vld [vmem:[#allocation6 + $0x100] sm:$0xff]  ;;  %v90_v54 = vld [vmem:[#allocation6 + $0x110] sm:$0xff] }
  0x33   :  { %243 = vmatprep.subr.bf16.mxu0 %v242_v14  ;;  %300 = vmatprep.subr.bf16.mxu1 %v242_v14  ;;  %v266_v52 = vpack.c.bf16 %v91_v50, %v89_v49  ;;  %v93_v55 = vld [vmem:[#allocation6 + $0x128] sm:$0xff]  ;;  %v95_v56 = vld [vmem:[#allocation6 + $0x138] sm:$0xff]  ;;  %v268_v57 = vpack.c.bf16 %v90_v54, %v88_v53  ;;  %v92_v59 = vld [vmem:[#allocation6 + $0x120] sm:$0xff] }
  0x34   :  { %v270_v58 = vpack.c.bf16 %v95_v56, %v93_v55  ;;  %v94_v60 = vld [vmem:[#allocation6 + $0x130] sm:$0xff]  ;;  %v97_v61 = vld [vmem:[#allocation6 + $0x148] sm:$0xff]  ;;  %v99_v62 = vld [vmem:[#allocation6 + $0x158] sm:$0xff] }
  0x35   :  { %v272_v63 = vpack.c.bf16 %v94_v60, %v92_v59  ;;  %v274_v0 = vpack.c.bf16 %v99_v62, %v97_v61  ;;  %v96_v1 = vld [vmem:[#allocation6 + $0x140] sm:$0xff]  ;;  %v98_v2 = vld [vmem:[#allocation6 + $0x150] sm:$0xff]  ;;  %v101_v3 = vld [vmem:[#allocation6 + $0x168] sm:$0xff] }
  0x36   :  { %v103_v4 = vld [vmem:[#allocation6 + $0x178] sm:$0xff]  ;;  %v276_v5 = vpack.c.bf16 %v98_v2, %v96_v1  ;;  %v100_v7 = vld [vmem:[#allocation6 + $0x160] sm:$0xff]  ;;  %v102_v8 = vld [vmem:[#allocation6 + $0x170] sm:$0xff] }
  0x37   :  { %v278_v6 = vpack.c.bf16 %v103_v4, %v101_v3  ;;  %v105_v9 = vld [vmem:[#allocation6 + $0x188] sm:$0xff]  ;;  %v107_v10 = vld [vmem:[#allocation6 + $0x198] sm:$0xff]  ;;  %v280_v11 = vpack.c.bf16 %v102_v8, %v100_v7  ;;  %v104_v13 = vld [vmem:[#allocation6 + $0x180] sm:$0xff] }
  0x38   :  { %v282_v12 = vpack.c.bf16 %v107_v10, %v105_v9  ;;  %v106_v14 = vld [vmem:[#allocation6 + $0x190] sm:$0xff]  ;;  %v109_v15 = vld [vmem:[#allocation6 + $0x1a8] sm:$0xff]  ;;  %v111_v16 = vld [vmem:[#allocation6 + $0x1b8] sm:$0xff] }
  0x39   :  { %v284_v17 = vpack.c.bf16 %v106_v14, %v104_v13  ;;  %v286_v18 = vpack.c.bf16 %v111_v16, %v109_v15  ;;  %v113_v21 = vld [vmem:[#allocation6 + $0x1c8] sm:$0xff]  ;;  %v115_v22 = vld [vmem:[#allocation6 + $0x1d8] sm:$0xff]  ;;  %v112_v25 = vld [vmem:[#allocation6 + $0x1c0] sm:$0xff] }
  0x3a   :  { %245 = vmatpush1.bf16.xpose.msra.mxu0 %v244_v19  ;;  %316 = vmatpush1.bf16.xpose.msra.mxu1 %v244_v19  ;;  %v108_v19 = vld [vmem:[#allocation6 + $0x1a0] sm:$0xff]  ;;  %v290_v24 = vpack.c.bf16 %v115_v22, %v113_v21  ;;  %v114_v26 = vld [vmem:[#allocation6 + $0x1d0] sm:$0xff] }
  0x3b   :  { %247 = vmatprep.subr.bf16.mxu0 %v246_v20  ;;  %301 = vmatprep.subr.bf16.mxu1 %v246_v20  ;;  %v110_v20 = vld [vmem:[#allocation6 + $0x1b0] sm:$0xff]  ;;  %v292_v29 = vpack.c.bf16 %v114_v26, %v112_v25  ;;  %v116_v31 = vld [vmem:[#allocation6 + $0x1e0] sm:$0xff] }
  0x3c   :  { %v288_v23 = vpack.c.bf16 %v110_v20, %v108_v19  ;;  %v118_v32 = vld [vmem:[#allocation6 + $0x1f0] sm:$0xff] }
  0x3d   :  { %v54_v35 = vld [vmem:[#allocation3 + $0x10] sm:$0xff] }
  0x42   :  { %249 = vmatpush1.bf16.xpose.msra.mxu0 %v248_v27  ;;  %317 = vmatpush1.bf16.xpose.msra.mxu1 %v248_v27  ;;  %v117_v27 = vld [vmem:[#allocation6 + $0x1e8] sm:$0xff] }
  0x43   :  { %251 = vmatprep.subr.bf16.mxu0 %v250_v28  ;;  %302 = vmatprep.subr.bf16.mxu1 %v250_v28  ;;  %v119_v28 = vld [vmem:[#allocation6 + $0x1f8] sm:$0xff] }
  0x44   :  { %v294_v30 = vpack.c.bf16 %v119_v28, %v117_v27 }
  0x4a   :  { %253 = vmatpush1.bf16.xpose.msra.mxu0 %v252_v33  ;;  %318 = vmatpush1.bf16.xpose.msra.mxu1 %v252_v33  ;;  %v296_v33 = vpack.c.bf16 %v118_v32, %v116_v31 }
  0x4b   :  { %255 = vmatprep.subr.bf16.mxu0 %v254_v34  ;;  %303 = vmatprep.subr.bf16.mxu1 %v254_v34  ;;  %v52_v34 = vld [vmem:[#allocation3] sm:$0xff] }
  0x52   :  { %257 = vmatpush1.bf16.xpose.msra.mxu0 %v256_v39  ;;  %319 = vmatpush1.bf16.xpose.msra.mxu1 %v256_v39 }
  0x53   :  { %259 = vmatprep.subr.bf16.mxu0 %v258_v40  ;;  %304 = vmatprep.subr.bf16.mxu1 %v258_v40 }
  0x5a   :  { %261 = vmatpush1.bf16.xpose.msra.mxu0 %v260_v45  ;;  %320 = vmatpush1.bf16.xpose.msra.mxu1 %v260_v45 }
  0x5b   :  { %263 = vmatprep.subr.bf16.mxu0 %v262_v46  ;;  %305 = vmatprep.subr.bf16.mxu1 %v262_v46 }
  0x62   :  { %265 = vmatpush1.bf16.xpose.msra.mxu0 %v264_v51  ;;  %321 = vmatpush1.bf16.xpose.msra.mxu1 %v264_v51 }
  0x63   :  { %267 = vmatprep.subr.bf16.mxu0 %v266_v52  ;;  %306 = vmatprep.subr.bf16.mxu1 %v266_v52 }
  0x6a   :  { %269 = vmatpush1.bf16.xpose.msra.mxu0 %v268_v57  ;;  %322 = vmatpush1.bf16.xpose.msra.mxu1 %v268_v57 }
  0x6b   :  { %271 = vmatprep.subr.bf16.mxu0 %v270_v58  ;;  %307 = vmatprep.subr.bf16.mxu1 %v270_v58 }
  0x72   :  { %273 = vmatpush1.bf16.xpose.msra.mxu0 %v272_v63  ;;  %323 = vmatpush1.bf16.xpose.msra.mxu1 %v272_v63 }
  0x73   :  { %275 = vmatprep.subr.bf16.mxu0 %v274_v0  ;;  %308 = vmatprep.subr.bf16.mxu1 %v274_v0 }
  0x7a   :  { %277 = vmatpush1.bf16.xpose.msra.mxu0 %v276_v5  ;;  %324 = vmatpush1.bf16.xpose.msra.mxu1 %v276_v5 }
  0x7b   :  { %279 = vmatprep.subr.bf16.mxu0 %v278_v6  ;;  %309 = vmatprep.subr.bf16.mxu1 %v278_v6 }
  0x82   :  { %281 = vmatpush1.bf16.xpose.msra.mxu0 %v280_v11  ;;  %325 = vmatpush1.bf16.xpose.msra.mxu1 %v280_v11 }
  0x83   :  { %283 = vmatprep.subr.bf16.mxu0 %v282_v12  ;;  %310 = vmatprep.subr.bf16.mxu1 %v282_v12 }
  0x8a   :  { %285 = vmatpush1.bf16.xpose.msra.mxu0 %v284_v17  ;;  %326 = vmatpush1.bf16.xpose.msra.mxu1 %v284_v17 }
  0x8b   :  { %287 = vmatprep.subr.bf16.mxu0 %v286_v18  ;;  %311 = vmatprep.subr.bf16.mxu1 %v286_v18 }
  0x92   :  { %289 = vmatpush1.bf16.xpose.msra.mxu0 %v288_v23  ;;  %327 = vmatpush1.bf16.xpose.msra.mxu1 %v288_v23 }
  0x93   :  { %291 = vmatprep.subr.bf16.mxu0 %v290_v24  ;;  %312 = vmatprep.subr.bf16.mxu1 %v290_v24 }
  0x9a   :  { %293 = vmatpush1.bf16.xpose.msra.mxu0 %v292_v29  ;;  %328 = vmatpush1.bf16.xpose.msra.mxu1 %v292_v29 }
  0x9b   :  { %295 = vmatprep.subr.bf16.mxu0 %v294_v30  ;;  %313 = vmatprep.subr.bf16.mxu1 %v294_v30 }
  0xa2   :  { %297 = vmatpush1.bf16.xpose.msra.mxu0 %v296_v33  ;;  %329 = vmatpush1.bf16.xpose.msra.mxu1 %v296_v33 }
  0xa9   :  { %185 = vmatmul.mubr.f32.vlgmr.msra.gmra.mrb[0].mxu0 %v52_v34  ;;  %191 = vmatmul.mubr.f32.vlgmr.msra.gmra.mrb[0].mxu1 %v54_v35 }
 0x17c   :  { %v186_v36 = vpop.f32.mrb[0].mxu0  ;;  %v192_v37 = vpop.f32.mrb[0].mxu1 }
 0x17d   :  { %212 = vst [vmem:[#allocation8] sm:$0xff] %v186_v36  ;;  %214 = vst [vmem:[#allocation8 + $0x10] sm:$0xff] %v192_v37  ;;  %v188_v38 = vpop.f32.mrb[1].mxu0  ;;  %v194_v39 = vpop.f32.mrb[1].mxu1 }
 0x17e   :  { %213 = vst [vmem:[#allocation8 + $0x8] sm:$0xff] %v188_v38  ;;  %215 = vst [vmem:[#allocation8 + $0x18] sm:$0xff] %v194_v39 }
 0x17f   :  { %390 = shalt.err (!%p387_p6)
}
 0x180   :  { %s391_s10 = scalar_lea.hbm %s474_s2, 512 }
 0x181   :  { %p392_p7 = scmp.ne.s32.totalorder %s474_s2, %s391_s10  ;;  %p395_p8 = scmp.lt.u32.totalorder %s391_s10, %s474_s2 }
 0x183   :  { %p397_p9 = pnand %p395_p8, %p392_p7 }
 0x185   :  { %400 = shalt.err (!%p397_p9)
}
 0x186   :  { %227 = dma.vmem_to_hbm [thread:$0]  %s222_s6, 512, %s474_s2, [#allocation5], %s408_s19, %s408_s19, %s409_s20  }
 0x187   :  { %405 = dma.done.wait [#allocation5], 512  }
 0x188   :  { %406 = vsyncadd [#allocation5], 4294966784 }
 0x189   :  { %231 = vsyncpa [#allocation4], 1 }
 0x18a   :  { %232 = vsyncpa [#allocation7], 1 }
 0x18b   :  { %233 = vsyncpa [#allocation5], 1 }

</bundles_post_ra>
